<compile_context>
chip_gen: v7x
topology: tpu7x:2x2x1
jax: 0.10.0
libtpu: 0.0.40
codegen_flags: <defaults>
</compile_context>

<pallas_src>
import jax
import jax.numpy as jnp
from jax.experimental import pallas as pl
from jax.experimental.pallas import tpu as pltpu


def _safety_critic_kernel(x_ref,
                          w1_ref, b1_ref,
                          w2_ref, b2_ref,
                          w3_ref, b3_ref,
                          w4_ref, b4_ref,
                          o_ref):
    """One batch tile of the fused 4-layer MLP.

    Matmuls take bf16 operands (MXU native) and accumulate in f32; the
    elementwise epilogue (bias, ReLU, layer-4 reduce, sigmoid) stays f32.
    """
    x = x_ref[...]                                    # (TB, d_in) bf16

    # Layer 1
    h = jnp.dot(x, w1_ref[...], preferred_element_type=jnp.float32) + b1_ref[...]
    h = jnp.maximum(h, 0.0)

    # Layer 2
    h = jnp.dot(h.astype(jnp.bfloat16), w2_ref[...],
                preferred_element_type=jnp.float32) + b2_ref[...]
    h = jnp.maximum(h, 0.0)

    # Layer 3
    h = jnp.dot(h.astype(jnp.bfloat16), w3_ref[...],
                preferred_element_type=jnp.float32) + b3_ref[...]
    h = jnp.maximum(h, 0.0)

    # Layer 4 (H -> 1): VPU multiply + XLU lane-reduce instead of a degenerate
    # (TB, H) x (H, 1) MXU pass. Result is stored lane-dense as (1, TB).
    row = jnp.sum(h * w4_ref[...], axis=-1)           # (TB,)  f32
    logits = row[None, :] + b4_ref[...]                # (1, TB) + (1, 1)
    o_ref[0] = jax.nn.sigmoid(logits).astype(o_ref.dtype)


@jax.jit
def safety_critic_forward(state, action, params):
    """Mirror of SafetyCritic.forward.

    state:  (B, obs_dim) float32
    action: (B,) or (B, action_dim) float32
    params: dict with
        w1 (obs_dim+action_dim, H) bf16, b1 (1, H) f32
        w2, w3 (H, H) bf16,            b2, b3 (1, H) f32
        w4 (1, H) f32 (output weight as a row), b4 (1, 1) f32
    returns (B, 1) float32
    """
    # action.unsqueeze(-1) if action.dim() == 1
    if action.ndim == 1:
        action = action[:, None]

    B, obs_dim = state.shape
    act_dim = action.shape[1]
    d_in = obs_dim + act_dim
    H = params["w2"].shape[0]

    # torch.cat([state, action], dim=1) done wrapper-side (32 bytes/row; fuses).
    x = jnp.concatenate([state, action], axis=1).astype(jnp.bfloat16)

    # --- Batch tile selection -------------------------------------------------
    # Large batches: up to 512 rows/step, but keep >= 4 grid steps when possible
    # so v7x's two TensorCores each get >= 2 steps and can still pipeline.
    # Small batches: one tile, rounded up to a multiple of 16 (bf16 sublane pack).
    TB_MAX = 512
    if B <= TB_MAX:
        TB = max(16, ((B + 15) // 16) * 16)
    else:
        TB = TB_MAX
        while TB > 128 and ((B + TB - 1) // TB) < 4:
            TB //= 2

    Bp = ((B + TB - 1) // TB) * TB
    pad = Bp - B
    if pad:
        x = jnp.pad(x, ((0, pad), (0, 0)))
    num_tiles = Bp // TB
    grid = (pl.cdiv(Bp, TB),)

    # Parameters use a constant index_map so they are DMA'd once and stay
    # VMEM-resident across grid steps. (pipeline_mode=pl.Buffered(1) could halve
    # their footprint; irrelevant at this size, so left at the default.)
    def _resident(arr):
        return pl.BlockSpec(arr.shape, lambda i: (0,) * arr.ndim)

    in_specs = [
        pl.BlockSpec((TB, d_in), lambda i: (i, 0)),
        _resident(params["w1"]), _resident(params["b1"]),
        _resident(params["w2"]), _resident(params["b2"]),
        _resident(params["w3"]), _resident(params["b3"]),
        _resident(params["w4"]), _resident(params["b4"]),
    ]
    # Lane-dense output slab: (num_tiles, 1, TB), one (1, 1, TB) block per step.
    out_specs = pl.BlockSpec((1, 1, TB), lambda i: (i, 0, 0))
    out_shape = jax.ShapeDtypeStruct((num_tiles, 1, TB), jnp.float32)

    # Advisory cost hint for XLA's scheduler (padded rows included; approximate).
    flops = 2 * Bp * (d_in * H + 2 * H * H) + 3 * Bp * H
    weight_bytes = 2 * (d_in * H + 2 * H * H) + 4 * (4 * H + 1)
    bytes_accessed = weight_bytes + 2 * Bp * d_in + 4 * Bp
    cost = pl.CostEstimate(flops=flops, transcendentals=Bp,
                           bytes_accessed=bytes_accessed)

    out = pl.pallas_call(
        _safety_critic_kernel,
        out_shape=out_shape,
        grid=grid,
        in_specs=in_specs,
        out_specs=out_specs,
        compiler_params=pltpu.CompilerParams(
            dimension_semantics=("parallel",)),
        cost_estimate=cost,
    )(x,
      params["w1"], params["b1"],
      params["w2"], params["b2"],
      params["w3"], params["b3"],
      params["w4"], params["b4"])

    # (num_tiles, 1, TB) -> (Bp, 1) -> drop padded rows.
    return out.reshape(Bp, 1)[:B]


def init_params(key, obs_dim, action_dim, hidden_size=256):
    """Deterministic init matching nn.Linear default (uniform +/- 1/sqrt(fan_in)).

    Hidden-layer weights stored bf16 (MXU native); layer-4 weight kept as an
    f32 (1, H) row (used on the VPU), biases f32.
    """
    d_in = obs_dim + action_dim
    params = {}

    key, kw, kb = jax.random.split(key, 3)
    bound = 1.0 / jnp.sqrt(jnp.float32(d_in))
    params["w1"] = jax.random.uniform(
        kw, (d_in, hidden_size), jnp.float32, -bound, bound).astype(jnp.bfloat16)
    params["b1"] = jax.random.uniform(kb, (1, hidden_size), jnp.float32, -bound, bound)

    for fan_in, name in [(hidden_size, "2"), (hidden_size, "3")]:
        key, kw, kb = jax.random.split(key, 3)
        bound = 1.0 / jnp.sqrt(jnp.float32(fan_in))
        params[f"w{name}"] = jax.random.uniform(
            kw, (fan_in, hidden_size), jnp.float32, -bound, bound).astype(jnp.bfloat16)
        params[f"b{name}"] = jax.random.uniform(
            kb, (1, hidden_size), jnp.float32, -bound, bound)

    key, kw, kb = jax.random.split(key, 3)
    bound = 1.0 / jnp.sqrt(jnp.float32(hidden_size))
    params["w4"] = jax.random.uniform(kw, (1, hidden_size), jnp.float32, -bound, bound)
    params["b4"] = jax.random.uniform(kb, (1, 1), jnp.float32, -bound, bound)
    return params


def reference_forward(state, action, params):
    """Pure-JAX reference with the same bf16-in / f32-accumulate numerics."""
    if action.ndim == 1:
        action = action[:, None]
    x = jnp.concatenate([state, action], axis=1).astype(jnp.bfloat16)

    def layer(x, w, b):
        return jnp.dot(x.astype(jnp.bfloat16), w,
                       preferred_element_type=jnp.float32) + b

    h = jnp.maximum(layer(x, params["w1"], params["b1"]), 0.0)
    h = jnp.maximum(layer(h, params["w2"], params["b2"]), 0.0)
    h = jnp.maximum(layer(h, params["w3"], params["b3"]), 0.0)
    logits = jnp.sum(h * params["w4"], axis=-1, keepdims=True) + params["b4"]
    return jax.nn.sigmoid(logits)


if __name__ == "__main__":
    obs_dim, action_dim, hidden_size = 12, 4, 256
    batch = 8

    key = jax.random.PRNGKey(0)
    key, ks, ka = jax.random.split(key, 3)
    state = jax.random.normal(ks, (batch, obs_dim), jnp.float32)
    action = jax.random.normal(ka, (batch, action_dim), jnp.float32)

    params = init_params(jax.random.PRNGKey(42), obs_dim, action_dim, hidden_size)

    out = safety_critic_forward(state, action, params)
    out = jax.block_until_ready(out)

    ref = reference_forward(state, action, params)
    assert out.shape == (batch, 1), out.shape
    assert jnp.allclose(out, ref, atol=2e-3, rtol=2e-3), "mismatch vs reference"

    print("KERNEL_OK")
</pallas_src>

<mosaic_0001>
module attributes {stable_mosaic.version = 11 : i64} {
  func.func @_safety_critic_kernel(%arg0: i32, %arg1: memref<16x16xbf16, #tpu.memory_space<vmem>>, %arg2: memref<16x256xbf16, #tpu.memory_space<vmem>>, %arg3: memref<1x256xf32, #tpu.memory_space<vmem>>, %arg4: memref<256x256xbf16, #tpu.memory_space<vmem>>, %arg5: memref<1x256xf32, #tpu.memory_space<vmem>>, %arg6: memref<256x256xbf16, #tpu.memory_space<vmem>>, %arg7: memref<1x256xf32, #tpu.memory_space<vmem>>, %arg8: memref<1x256xf32, #tpu.memory_space<vmem>>, %arg9: memref<1x1xf32, #tpu.memory_space<vmem>>, %arg10: memref<1x1x16xf32, #tpu.memory_space<vmem>>) attributes {dimension_semantics = [#tpu.dimension_semantics<parallel>], iteration_bounds = array<i64: 1>, scalar_prefetch = 0 : i64, scratch_operands = 0 : i64, tpu.core_type = #tpu.core_type<tc>, window_params = [{transform_indices = @transform_0, window_bounds = array<i64: 16, 16>}, {pipeline_mode = #tpu.pipeline_mode<synchronous>, transform_indices = @transform_1, window_bounds = array<i64: 16, 256>}, {pipeline_mode = #tpu.pipeline_mode<synchronous>, transform_indices = @transform_2, window_bounds = array<i64: 1, 256>}, {pipeline_mode = #tpu.pipeline_mode<synchronous>, transform_indices = @transform_3, window_bounds = array<i64: 256, 256>}, {pipeline_mode = #tpu.pipeline_mode<synchronous>, transform_indices = @transform_4, window_bounds = array<i64: 1, 256>}, {pipeline_mode = #tpu.pipeline_mode<synchronous>, transform_indices = @transform_5, window_bounds = array<i64: 256, 256>}, {pipeline_mode = #tpu.pipeline_mode<synchronous>, transform_indices = @transform_6, window_bounds = array<i64: 1, 256>}, {pipeline_mode = #tpu.pipeline_mode<synchronous>, transform_indices = @transform_7, window_bounds = array<i64: 1, 256>}, {pipeline_mode = #tpu.pipeline_mode<synchronous>, transform_indices = @transform_8, window_bounds = array<i64: 1, 1>}, {transform_indices = @transform_9, window_bounds = array<i64: 1, 1, 16>}]} {
    %c0 = arith.constant 0 : index
    %c0_0 = arith.constant 0 : index
    %0 = vector.load %arg1[%c0, %c0_0] : memref<16x16xbf16, #tpu.memory_space<vmem>>, vector<16x16xbf16>
    %c0_1 = arith.constant 0 : index
    %c0_2 = arith.constant 0 : index
    %1 = vector.load %arg2[%c0_1, %c0_2] : memref<16x256xbf16, #tpu.memory_space<vmem>>, vector<16x256xbf16>
    %cst = arith.constant dense<0.000000e+00> : vector<16x256xf32>
    %2 = tpu.matmul %0, %1, %cst {dimension_numbers = #tpu.dot_dimension_numbers<[1], [0], [0], [1], [0, 0, 1, 1], [], []>} : vector<16x16xbf16>, vector<16x256xbf16>, vector<16x256xf32> -> vector<16x256xf32>
    %c0_3 = arith.constant 0 : index
    %c0_4 = arith.constant 0 : index
    %3 = vector.load %arg3[%c0_3, %c0_4] : memref<1x256xf32, #tpu.memory_space<vmem>>, vector<1x256xf32>
    %4 = vector.broadcast %3 : vector<1x256xf32> to vector<16x256xf32>
    %5 = arith.addf %2, %4 : vector<16x256xf32>
    %cst_5 = arith.constant 0.000000e+00 : f32
    %6 = vector.broadcast %cst_5 : f32 to vector<16x256xf32>
    %7 = arith.maximumf %5, %6 : vector<16x256xf32>
    %8 = arith.truncf %7 : vector<16x256xf32> to vector<16x256xbf16>
    %c0_6 = arith.constant 0 : index
    %c0_7 = arith.constant 0 : index
    %9 = vector.load %arg4[%c0_6, %c0_7] : memref<256x256xbf16, #tpu.memory_space<vmem>>, vector<256x256xbf16>
    %cst_8 = arith.constant dense<0.000000e+00> : vector<16x256xf32>
    %10 = tpu.matmul %8, %9, %cst_8 {dimension_numbers = #tpu.dot_dimension_numbers<[1], [0], [0], [1], [0, 0, 1, 1], [], []>} : vector<16x256xbf16>, vector<256x256xbf16>, vector<16x256xf32> -> vector<16x256xf32>
    %c0_9 = arith.constant 0 : index
    %c0_10 = arith.constant 0 : index
    %11 = vector.load %arg5[%c0_9, %c0_10] : memref<1x256xf32, #tpu.memory_space<vmem>>, vector<1x256xf32>
    %12 = vector.broadcast %11 : vector<1x256xf32> to vector<16x256xf32>
    %13 = arith.addf %10, %12 : vector<16x256xf32>
    %cst_11 = arith.constant 0.000000e+00 : f32
    %14 = vector.broadcast %cst_11 : f32 to vector<16x256xf32>
    %15 = arith.maximumf %13, %14 : vector<16x256xf32>
    %16 = arith.truncf %15 : vector<16x256xf32> to vector<16x256xbf16>
    %c0_12 = arith.constant 0 : index
    %c0_13 = arith.constant 0 : index
    %17 = vector.load %arg6[%c0_12, %c0_13] : memref<256x256xbf16, #tpu.memory_space<vmem>>, vector<256x256xbf16>
    %cst_14 = arith.constant dense<0.000000e+00> : vector<16x256xf32>
    %18 = tpu.matmul %16, %17, %cst_14 {dimension_numbers = #tpu.dot_dimension_numbers<[1], [0], [0], [1], [0, 0, 1, 1], [], []>} : vector<16x256xbf16>, vector<256x256xbf16>, vector<16x256xf32> -> vector<16x256xf32>
    %c0_15 = arith.constant 0 : index
    %c0_16 = arith.constant 0 : index
    %19 = vector.load %arg7[%c0_15, %c0_16] : memref<1x256xf32, #tpu.memory_space<vmem>>, vector<1x256xf32>
    %20 = vector.broadcast %19 : vector<1x256xf32> to vector<16x256xf32>
    %21 = arith.addf %18, %20 : vector<16x256xf32>
    %cst_17 = arith.constant 0.000000e+00 : f32
    %22 = vector.broadcast %cst_17 : f32 to vector<16x256xf32>
    %23 = arith.maximumf %21, %22 : vector<16x256xf32>
    %c0_18 = arith.constant 0 : index
    %c0_19 = arith.constant 0 : index
    %24 = vector.load %arg8[%c0_18, %c0_19] : memref<1x256xf32, #tpu.memory_space<vmem>>, vector<1x256xf32>
    %25 = vector.broadcast %24 : vector<1x256xf32> to vector<16x256xf32>
    %26 = arith.mulf %23, %25 : vector<16x256xf32>
    %cst_20 = arith.constant dense<0.000000e+00> : vector<16xf32>
    %27 = vector.multi_reduction <add>, %26, %cst_20 [1] : vector<16x256xf32> to vector<16xf32>
    %28 = vector.shape_cast %27 : vector<16xf32> to vector<1x16xf32>
    %c0_21 = arith.constant 0 : index
    %c0_22 = arith.constant 0 : index
    %29 = vector.load %arg9[%c0_21, %c0_22] : memref<1x1xf32, #tpu.memory_space<vmem>>, vector<1x1xf32>
    %30 = vector.broadcast %29 : vector<1x1xf32> to vector<1x16xf32>
    %31 = arith.addf %28, %30 : vector<1x16xf32>
    %32 = arith.negf %31 : vector<1x16xf32>
    %33 = math.exp %32 : vector<1x16xf32>
    %cst_23 = arith.constant 1.000000e+00 : f32
    %34 = vector.broadcast %cst_23 : f32 to vector<1x16xf32>
    %35 = arith.addf %34, %33 : vector<1x16xf32>
    %36 = arith.divf %34, %35 : vector<1x16xf32>
    %c0_24 = arith.constant 0 : index
    %c0_25 = arith.constant 0 : index
    %c0_26 = arith.constant 0 : index
    %37 = vector.load %arg10[%c0_24, %c0_25, %c0_26] : memref<1x1x16xf32, #tpu.memory_space<vmem>>, vector<1x1x16xf32>
    %38 = vector.shape_cast %37 : vector<1x1x16xf32> to vector<1x16xf32>
    %39 = vector.shape_cast %36 : vector<1x16xf32> to vector<1x1x16xf32>
    tpu.vector_store %arg10[%c0_24, %c0_25, %c0_26], %39 {strides = array<i32>} : memref<1x1x16xf32, #tpu.memory_space<vmem>>, vector<1x1x16xf32>,
    return
  }
  func.func @transform_0(%arg0: i32) -> (i32, i32) {
    %c0_i32 = arith.constant 0 : i32
    %c0_i32_0 = arith.constant 0 : i32
    return %arg0, %c0_i32 : i32, i32
  }
  func.func @transform_1(%arg0: i32) -> (i32, i32) {
    %c0_i32 = arith.constant 0 : i32
    %c0_i32_0 = arith.constant 0 : i32
    %c0_i32_1 = arith.constant 0 : i32
    return %c0_i32, %c0_i32_0 : i32, i32
  }
  func.func @transform_2(%arg0: i32) -> (i32, i32) {
    %c0_i32 = arith.constant 0 : i32
    %c0_i32_0 = arith.constant 0 : i32
    %c0_i32_1 = arith.constant 0 : i32
    return %c0_i32, %c0_i32_0 : i32, i32
  }
  func.func @transform_3(%arg0: i32) -> (i32, i32) {
    %c0_i32 = arith.constant 0 : i32
    %c0_i32_0 = arith.constant 0 : i32
    %c0_i32_1 = arith.constant 0 : i32
    return %c0_i32, %c0_i32_0 : i32, i32
  }
  func.func @transform_4(%arg0: i32) -> (i32, i32) {
    %c0_i32 = arith.constant 0 : i32
    %c0_i32_0 = arith.constant 0 : i32
    %c0_i32_1 = arith.constant 0 : i32
    return %c0_i32, %c0_i32_0 : i32, i32
  }
  func.func @transform_5(%arg0: i32) -> (i32, i32) {
    %c0_i32 = arith.constant 0 : i32
    %c0_i32_0 = arith.constant 0 : i32
    %c0_i32_1 = arith.constant 0 : i32
    return %c0_i32, %c0_i32_0 : i32, i32
  }
  func.func @transform_6(%arg0: i32) -> (i32, i32) {
    %c0_i32 = arith.constant 0 : i32
    %c0_i32_0 = arith.constant 0 : i32
    %c0_i32_1 = arith.constant 0 : i32
    return %c0_i32, %c0_i32_0 : i32, i32
  }
  func.func @transform_7(%arg0: i32) -> (i32, i32) {
    %c0_i32 = arith.constant 0 : i32
    %c0_i32_0 = arith.constant 0 : i32
    %c0_i32_1 = arith.constant 0 : i32
    return %c0_i32, %c0_i32_0 : i32, i32
  }
  func.func @transform_8(%arg0: i32) -> (i32, i32) {
    %c0_i32 = arith.constant 0 : i32
    %c0_i32_0 = arith.constant 0 : i32
    %c0_i32_1 = arith.constant 0 : i32
    return %c0_i32, %c0_i32_0 : i32, i32
  }
  func.func @transform_9(%arg0: i32) -> (i32, i32, i32) {
    %c0_i32 = arith.constant 0 : i32
    %c0_i32_0 = arith.constant 0 : i32
    %c0_i32_1 = arith.constant 0 : i32
    return %arg0, %c0_i32, %c0_i32_0 : i32, i32, i32
  }
}

</mosaic_0001>

<bundles_post_ra>
// kernel: safety_critic_forward.1
= control target key start
LH: loop header
LB: loop body
LE: loop exit
PB: predicated region body
PF: predicated region fallthrough
CT: control target
= control target key end

     0   :  { %s1075_s0 = inlined_call_operand.vmem [shape: bf16[16,16], index: 0, kind: input, shape index: {}]   ;;  %s1076_s1 = inlined_call_operand.vmem [shape: bf16[16,256], index: 1, kind: input, shape index: {}]   ;;  %s1077_s2 = inlined_call_operand.vmem [shape: f32[1,256], index: 2, kind: input, shape index: {}]   ;;  %s1078_s3 = inlined_call_operand.hbm [shape: bf16[256,256], index: 3, kind: input, shape index: {}]   ;;  %s1079_s4 = inlined_call_operand.vmem [shape: f32[1,256], index: 4, kind: input, shape index: {}]   ;;  %s1080_s5 = inlined_call_operand.hbm [shape: bf16[256,256], index: 5, kind: input, shape index: {}]   ;;  %s1081_s6 = inlined_call_operand.vmem [shape: f32[1,256], index: 6, kind: input, shape index: {}]   ;;  %s1082_s7 = inlined_call_operand.vmem [shape: f32[1,256], index: 7, kind: input, shape index: {}]   ;;  %s1083_s8 = inlined_call_operand.<no memory space> [shape: f32[1,1], index: 8, kind: input, shape index: {}]   ;;  %s1084_s9 = inlined_call_operand.vmem [shape: f32[1,1,16], index: 9, kind: output, shape index: {}]  }
   0x1   :  { %v14_v0 = vstv %s1083_s8 }
   0x2   :  { %15 = vst [vmem:[#allocation2] sm:$0x1] %v14_v0 }
   0x3   :  { %16 = vsyncpa [#allocation4], 0 }
   0x4   :  { %17 = vsyncpa [#allocation6], 0  ;;  %s954_s11 = smov [#allocation3]   ;;  %s906_s15 = scalar_lea.hbm %s1078_s3, 4096 }
   0x5   :  { %s29_s12 = sshll.u32 %s954_s11, 4  ;;  %p907_p0 = scmp.ne.s32.totalorder %s1078_s3, %s906_s15  ;;  %s30_s12 = int_to_ptr.vmem [resolvable:$true] %s29_s12 }
   0x6   :  { %p910_p1 = scmp.lt.u32.totalorder %s906_s15, %s1078_s3 }
   0x8   :  { %p912_p2 = pnand %p910_p1, %p907_p0 }
   0xa   :  { %915 = shalt.err (!%p912_p2)
}
   0xb   :  { %s916_s8 = scalar_lea.vmem %s30_s12, 4096  ;;  %p921_p4 = scmp.lt.s32.totalorder %s30_s12, %s30_s12 }
   0xc   :  { %p917_p3 = scmp.ne.s32.totalorder %s30_s12, %s916_s8  ;;  %p922_p5 = scmp.lt.s32.totalorder %s916_s8, %s916_s8 }
   0xe   :  { %p923_p6 = por %p922_p5, %p921_p4 }
  0x10   :  { %p924_p7 = pnand %p923_p6, %p917_p3 }
  0x12   :  { %927 = shalt.err (!%p924_p7)
}
  0x13   :  { %s955_s20 = smov 128   ;;  %s956_s21 = smov 8  }
  0x14   :  { %35 = dma.hbm_to_vmem [thread:$0]  %s1078_s3, 4096, %s30_s12, [#allocation4], %s955_s20, %s955_s20, %s956_s21  }
  0x15   :  { %s957_s24 = smov [#allocation5]   ;;  %s928_s28 = scalar_lea.hbm %s1080_s5, 4096 }
  0x16   :  { %s43_s25 = sshll.u32 %s957_s24, 4  ;;  %p929_p8 = scmp.ne.s32.totalorder %s1080_s5, %s928_s28  ;;  %s44_s25 = int_to_ptr.vmem [resolvable:$true] %s43_s25 }
  0x17   :  { %p932_p9 = scmp.lt.u32.totalorder %s928_s28, %s1080_s5 }
  0x19   :  { %p934_p10 = pnand %p932_p9, %p929_p8 }
  0x1b   :  { %937 = shalt.err (!%p934_p10)
}
  0x1c   :  { %s938_s13 = scalar_lea.vmem %s44_s25, 4096  ;;  %p943_p12 = scmp.lt.s32.totalorder %s44_s25, %s44_s25 }
  0x1d   :  { %p939_p11 = scmp.ne.s32.totalorder %s44_s25, %s938_s13  ;;  %p944_p13 = scmp.lt.s32.totalorder %s938_s13, %s938_s13 }
  0x1f   :  { %p945_p0 = por %p944_p13, %p943_p12 }
  0x21   :  { %p946_p1 = pnand %p945_p0, %p939_p11 }
  0x23   :  { %949 = shalt.err (!%p946_p1)
}
  0x24   :  { %49 = dma.hbm_to_vmem [thread:$0]  %s1080_s5, 4096, %s44_s25, [#allocation6], %s955_s20, %s955_s20, %s956_s21  }
  0x25   :  { %950 = dma.done.wait [#allocation4], 4096  }
  0x26   :  { %951 = vsyncadd [#allocation4], 4294963200 }
  0x27   :  { %952 = dma.done.wait [#allocation6], 4096  }
  0x28   :  { %953 = vsyncadd [#allocation6], 4294963200  ;;  %v958_v1 = vmov 0   ;;  %v798_v2 = vld [vmem:[%s1076_s1 + $0x4] ss:$8 sps:$4 sm:$0xff]   ;;  %vm94_vm0 = vcmask 130048  }
  0x29   :  { %130 = vmatprep.mubr.bf16.mxu0 %v958_v1  ;;  %796 = vset.pattern.permute.xlu1 %v958_v1  ;;  %v800_v3 = vld [vmem:[%s1076_s1] ss:$8 sps:$4 sm:$0xff]   ;;  %v807_v8 = vld [vmem:[#allocation3 + $0x10] ss:$8 sps:$4 sm:$0xff]   ;;  %vm710_vm1 = vcmask 130112   ;;  %vm713_vm2 = vcmask 122880  }
  0x2a   :  { %797 = vset.pattern.permute.xlu0 %v958_v1  ;;  %98 = vmatprep.subr.bf16.mxu0 %v798_v2  ;;  %v801_v4 = vld [vmem:[%s1075_s0] sm:$0xff]   ;;  %v813_v12 = vld [vmem:[#allocation3 + $0x30] ss:$8 sps:$4 sm:$0xff]   ;;  %v69_v1 = vlaneseq }
  0x2b   :  { %99 = vmatpush1.bf16.msra.mxu0 %v800_v3  ;;  %v802_v5 = vld [vmem:[#allocation3 + $0x4] ss:$8 sps:$4 sm:$0xff]   ;;  %v804_v6 = vld [vmem:[#allocation3] ss:$8 sps:$4 sm:$0xff]   ;;  %v805_v7 = vld [vmem:[#allocation3 + $0x14] ss:$8 sps:$4 sm:$0xff]  }
  0x2c   :  { %351 = vmatprep.subr.bf16.mxu1 %v802_v5  ;;  %v808_v9 = vld [vmem:[#allocation3 + $0x24] ss:$8 sps:$4 sm:$0xff]   ;;  %v810_v10 = vld [vmem:[#allocation3 + $0x20] ss:$8 sps:$4 sm:$0xff]   ;;  %v811_v11 = vld [vmem:[#allocation3 + $0x34] ss:$8 sps:$4 sm:$0xff]  }
  0x2d   :  { %352 = vmatpush1.bf16.msra.mxu1 %v804_v6  ;;  %v814_v13 = vld [vmem:[#allocation3 + $0x44] ss:$8 sps:$4 sm:$0xff]   ;;  %v816_v14 = vld [vmem:[#allocation3 + $0x40] ss:$8 sps:$4 sm:$0xff]   ;;  %v817_v15 = vld [vmem:[#allocation3 + $0x54] ss:$8 sps:$4 sm:$0xff]  }
  0x2e   :  { %724 = vmatmul.mubr.msk.bf16.vlgmr.msra.gmra.mrb[0].mxu0 %vm94_vm0, %v801_v4  ;;  %353 = vmatprep.subr.bf16.mxu1 %v805_v7  ;;  %v819_v16 = vld [vmem:[#allocation3 + $0x50] ss:$8 sps:$4 sm:$0xff]   ;;  %v820_v17 = vld [vmem:[#allocation3 + $0x64] ss:$8 sps:$4 sm:$0xff]   ;;  %v822_v18 = vld [vmem:[#allocation3 + $0x60] ss:$8 sps:$4 sm:$0xff]  }
  0x2f   :  { %v823_v19 = vld [vmem:[#allocation3 + $0x74] ss:$8 sps:$4 sm:$0xff]   ;;  %v825_v20 = vld [vmem:[#allocation3 + $0x70] ss:$8 sps:$4 sm:$0xff]   ;;  %v826_v21 = vld [vmem:[#allocation3 + $0x84] ss:$8 sps:$4 sm:$0xff]  }
  0x30   :  { %v828_v22 = vld [vmem:[#allocation3 + $0x80] ss:$8 sps:$4 sm:$0xff]   ;;  %v829_v23 = vld [vmem:[#allocation3 + $0x94] ss:$8 sps:$4 sm:$0xff]   ;;  %v831_v24 = vld [vmem:[#allocation3 + $0x90] ss:$8 sps:$4 sm:$0xff]  }
  0x31   :  { %354 = vmatpush1.bf16.msra.mxu1 %v807_v8  ;;  %v832_v25 = vld [vmem:[#allocation3 + $0xa4] ss:$8 sps:$4 sm:$0xff]   ;;  %v834_v26 = vld [vmem:[#allocation3 + $0xa0] ss:$8 sps:$4 sm:$0xff]   ;;  %v835_v27 = vld [vmem:[#allocation3 + $0xb4] ss:$8 sps:$4 sm:$0xff]  }
  0x32   :  { %355 = vmatprep.subr.bf16.mxu1 %v808_v9  ;;  %v837_v28 = vld [vmem:[#allocation3 + $0xb0] ss:$8 sps:$4 sm:$0xff]   ;;  %v838_v29 = vld [vmem:[#allocation3 + $0xc4] ss:$8 sps:$4 sm:$0xff]   ;;  %v840_v30 = vld [vmem:[#allocation3 + $0xc0] ss:$8 sps:$4 sm:$0xff]  }
  0x33   :  { %v841_v31 = vld [vmem:[#allocation3 + $0xd4] ss:$8 sps:$4 sm:$0xff]   ;;  %v843_v32 = vld [vmem:[#allocation3 + $0xd0] ss:$8 sps:$4 sm:$0xff]   ;;  %v844_v33 = vld [vmem:[#allocation3 + $0xe4] ss:$8 sps:$4 sm:$0xff]  }
  0x34   :  { %v846_v34 = vld [vmem:[#allocation3 + $0xe0] ss:$8 sps:$4 sm:$0xff]   ;;  %v847_v35 = vld [vmem:[#allocation3 + $0xf4] ss:$8 sps:$4 sm:$0xff]   ;;  %v849_v36 = vld [vmem:[#allocation3 + $0xf0] ss:$8 sps:$4 sm:$0xff]  }
  0x35   :  { %356 = vmatpush1.bf16.msra.mxu1 %v810_v10  ;;  %v850_v37 = vld [vmem:[#allocation5] ss:$8 sps:$4 sm:$0xff]   ;;  %v852_v38 = vld [vmem:[#allocation5 + $0x4] ss:$8 sps:$4 sm:$0xff]   ;;  %v855_v39 = vld [vmem:[#allocation5 + $0x14] ss:$8 sps:$4 sm:$0xff]  }
  0x36   :  { %357 = vmatprep.subr.bf16.mxu1 %v811_v11  ;;  %604 = vmatprep.subr.bf16.mxu0 %v852_v38  ;;  %v853_v40 = vld [vmem:[#allocation5 + $0x10] ss:$8 sps:$4 sm:$0xff]   ;;  %v858_v41 = vld [vmem:[#allocation5 + $0x24] ss:$8 sps:$4 sm:$0xff]   ;;  %v856_v42 = vld [vmem:[#allocation5 + $0x20] ss:$8 sps:$4 sm:$0xff]  }
  0x37   :  { %605 = vmatpush1.bf16.msra.mxu0 %v850_v37  ;;  %v861_v43 = vld [vmem:[#allocation5 + $0x34] ss:$8 sps:$4 sm:$0xff]   ;;  %v859_v44 = vld [vmem:[#allocation5 + $0x30] ss:$8 sps:$4 sm:$0xff]   ;;  %v864_v45 = vld [vmem:[#allocation5 + $0x44] ss:$8 sps:$4 sm:$0xff]  }
  0x38   :  { %606 = vmatprep.subr.bf16.mxu0 %v855_v39  ;;  %v862_v46 = vld [vmem:[#allocation5 + $0x40] ss:$8 sps:$4 sm:$0xff]   ;;  %v867_v47 = vld [vmem:[#allocation5 + $0x54] ss:$8 sps:$4 sm:$0xff]   ;;  %v865_v48 = vld [vmem:[#allocation5 + $0x50] ss:$8 sps:$4 sm:$0xff]  }
  0x39   :  { %358 = vmatpush1.bf16.msra.mxu1 %v813_v12  ;;  %v870_v49 = vld [vmem:[#allocation5 + $0x64] ss:$8 sps:$4 sm:$0xff]   ;;  %v868_v50 = vld [vmem:[#allocation5 + $0x60] ss:$8 sps:$4 sm:$0xff]   ;;  %v873_v51 = vld [vmem:[#allocation5 + $0x74] ss:$8 sps:$4 sm:$0xff]  }
  0x3a   :  { %359 = vmatprep.subr.bf16.mxu1 %v814_v13  ;;  %v871_v52 = vld [vmem:[#allocation5 + $0x70] ss:$8 sps:$4 sm:$0xff]   ;;  %v876_v53 = vld [vmem:[#allocation5 + $0x84] ss:$8 sps:$4 sm:$0xff]   ;;  %v874_v54 = vld [vmem:[#allocation5 + $0x80] ss:$8 sps:$4 sm:$0xff]  }
  0x3b   :  { %607 = vmatpush1.bf16.msra.mxu0 %v853_v40  ;;  %v879_v55 = vld [vmem:[#allocation5 + $0x94] ss:$8 sps:$4 sm:$0xff]   ;;  %v877_v56 = vld [vmem:[#allocation5 + $0x90] ss:$8 sps:$4 sm:$0xff]   ;;  %v882_v57 = vld [vmem:[#allocation5 + $0xa4] ss:$8 sps:$4 sm:$0xff]  }
  0x3c   :  { %608 = vmatprep.subr.bf16.mxu0 %v858_v41  ;;  %v880_v58 = vld [vmem:[#allocation5 + $0xa0] ss:$8 sps:$4 sm:$0xff]   ;;  %v885_v59 = vld [vmem:[#allocation5 + $0xb4] ss:$8 sps:$4 sm:$0xff]   ;;  %v883_v60 = vld [vmem:[#allocation5 + $0xb0] ss:$8 sps:$4 sm:$0xff]  }
  0x3d   :  { %360 = vmatpush1.bf16.msra.mxu1 %v816_v14  ;;  %v888_v61 = vld [vmem:[#allocation5 + $0xc4] ss:$8 sps:$4 sm:$0xff]   ;;  %v886_v62 = vld [vmem:[#allocation5 + $0xc0] ss:$8 sps:$4 sm:$0xff]   ;;  %v891_v63 = vld [vmem:[#allocation5 + $0xd4] ss:$8 sps:$4 sm:$0xff]  }
  0x3e   :  { %361 = vmatprep.subr.bf16.mxu1 %v817_v15  ;;  %v889_v0 = vld [vmem:[#allocation5 + $0xd0] ss:$8 sps:$4 sm:$0xff]   ;;  %v1046_v2 = vshrl.u32 %v69_v1, 7  ;;  %v67_v4 = vld [vmem:[%s1077_s2] sm:$0x3] }
  0x3f   :  { %609 = vmatpush1.bf16.msra.mxu0 %v856_v42 }
  0x40   :  { %610 = vmatprep.subr.bf16.mxu0 %v861_v43  ;;  %v1049_v3 = vsub.s32 0, %v1046_v2  ;;  %v75_v5 = vsub.s32 1, %v1046_v2  ;;  %v673_v43 = vld [vmem:[#allocation2] sm:$0x1] }
  0x41   :  { %362 = vmatpush1.bf16.msra.mxu1 %v819_v16  ;;  %676 = vperm.xlu1 %796, %v673_v43  }
  0x42   :  { %363 = vmatprep.subr.bf16.mxu1 %v820_v17  ;;  %v72_v6 = vrot.slane %v67_v4, %v1049_v3  ;;  %v76_v7 = vrot.slane %v67_v4, %v75_v5 }
  0x43   :  { %611 = vmatpush1.bf16.msra.mxu0 %v859_v44  ;;  %v432_v44 = vld [vmem:[%s1081_s6] sm:$0x3] }
  0x44   :  { %612 = vmatprep.subr.bf16.mxu0 %v864_v45  ;;  %v437_v45 = vrot.slane %v432_v44, %v1049_v3 }
  0x45   :  { %364 = vmatpush1.bf16.msra.mxu1 %v822_v18 }
  0x46   :  { %365 = vmatprep.subr.bf16.mxu1 %v823_v19 }
  0x47   :  { %613 = vmatpush1.bf16.msra.mxu0 %v862_v46  ;;  %v441_v46 = vrot.slane %v432_v44, %v75_v5 }
  0x48   :  { %614 = vmatprep.subr.bf16.mxu0 %v867_v47  ;;  %v651_v47 = vld [vmem:[%s1082_s7] sm:$0x3] }
  0x49   :  { %366 = vmatpush1.bf16.msra.mxu1 %v825_v20 }
  0x4a   :  { %367 = vmatprep.subr.bf16.mxu1 %v826_v21 }
  0x4b   :  { %615 = vmatpush1.bf16.msra.mxu0 %v865_v48 }
  0x4c   :  { %616 = vmatprep.subr.bf16.mxu0 %v870_v49 }
  0x4d   :  { %368 = vmatpush1.bf16.msra.mxu1 %v828_v22  ;;  %v894_v22 = vld [vmem:[#allocation5 + $0xe4] ss:$8 sps:$4 sm:$0xff]  }
  0x4e   :  { %369 = vmatprep.subr.bf16.mxu1 %v829_v23  ;;  %v892_v23 = vld [vmem:[#allocation5 + $0xe0] ss:$8 sps:$4 sm:$0xff]  }
  0x4f   :  { %617 = vmatpush1.bf16.msra.mxu0 %v868_v50 }
  0x50   :  { %618 = vmatprep.subr.bf16.mxu0 %v873_v51  ;;  %v656_v51 = vrot.slane %v651_v47, %v1049_v3 }
  0x51   :  { %370 = vmatpush1.bf16.msra.mxu1 %v831_v24  ;;  %v897_v24 = vld [vmem:[#allocation5 + $0xf4] ss:$8 sps:$4 sm:$0xff]  }
  0x52   :  { %371 = vmatprep.subr.bf16.mxu1 %v832_v25  ;;  %v895_v25 = vld [vmem:[#allocation5 + $0xf0] ss:$8 sps:$4 sm:$0xff]  }
  0x53   :  { %619 = vmatpush1.bf16.msra.mxu0 %v871_v52 }
  0x54   :  { %620 = vmatprep.subr.bf16.mxu0 %v876_v53 }
  0x55   :  { %372 = vmatpush1.bf16.msra.mxu1 %v834_v26  ;;  %v179_v26 = vld [vmem:[%s1079_s4] sm:$0x3] }
  0x56   :  { %373 = vmatprep.subr.bf16.mxu1 %v835_v27  ;;  %v184_v27 = vrot.slane %v179_v26, %v1049_v3 }
  0x57   :  { %621 = vmatpush1.bf16.msra.mxu0 %v874_v54  ;;  %v660_v54 = vrot.slane %v651_v47, %v75_v5 }
  0x58   :  { %622 = vmatprep.subr.bf16.mxu0 %v879_v55 }
  0x59   :  { %374 = vmatpush1.bf16.msra.mxu1 %v837_v28  ;;  %v188_v28 = vrot.slane %v179_v26, %v75_v5 }
  0x5a   :  { %375 = vmatprep.subr.bf16.mxu1 %v838_v29 }
  0x5b   :  { %623 = vmatpush1.bf16.msra.mxu0 %v877_v56 }
  0x5c   :  { %624 = vmatprep.subr.bf16.mxu0 %v882_v57 }
  0x5d   :  { %376 = vmatpush1.bf16.msra.mxu1 %v840_v30 }
  0x5e   :  { %377 = vmatprep.subr.bf16.mxu1 %v841_v31 }
  0x5f   :  { %625 = vmatpush1.bf16.msra.mxu0 %v880_v58 }
  0x60   :  { %626 = vmatprep.subr.bf16.mxu0 %v885_v59 }
  0x61   :  { %378 = vmatpush1.bf16.msra.mxu1 %v843_v32 }
  0x62   :  { %379 = vmatprep.subr.bf16.mxu1 %v844_v33 }
  0x63   :  { %627 = vmatpush1.bf16.msra.mxu0 %v883_v60 }
  0x64   :  { %628 = vmatprep.subr.bf16.mxu0 %v888_v61 }
  0x65   :  { %380 = vmatpush1.bf16.msra.mxu1 %v846_v34 }
  0x66   :  { %381 = vmatprep.subr.bf16.mxu1 %v847_v35 }
  0x67   :  { %629 = vmatpush1.bf16.msra.mxu0 %v886_v62 }
  0x68   :  { %630 = vmatprep.subr.bf16.mxu0 %v891_v63 }
  0x69   :  { %382 = vmatpush1.bf16.msra.mxu1 %v849_v36 }
  0x6b   :  { %631 = vmatpush1.bf16.msra.mxu0 %v889_v0 }
  0x6c   :  { %632 = vmatprep.subr.bf16.mxu0 %v894_v22 }
  0x6f   :  { %633 = vmatpush1.bf16.msra.mxu0 %v892_v23 }
  0x70   :  { %634 = vmatprep.subr.bf16.mxu0 %v897_v24 }
  0x73   :  { %635 = vmatpush1.bf16.msra.mxu0 %v895_v25 }
 0x101   :  { %v132_v8 = vpop.f32.mrb[0].mxu0 }
 0x102   :  { %v133_v9 = vadd.f32 %v132_v8, %v72_v6  ;;  %v134_v10 = vpop.f32.mrb[1].mxu0  ;;  %v677_v8 = vpop.permute.xlu1 %676 }
 0x103   :  { %v135_v11 = vadd.f32 %v134_v10, %v76_v7  ;;  %v136_v12 = vpop.f32.mrb[2].mxu0 }
 0x104   :  { %v137_v13 = vadd.f32 %v136_v12, %v72_v6  ;;  %v138_v14 = vpop.f32.mrb[3].mxu0  ;;  %v141_v16 = vmax.f32 %v133_v9, 0.0  ;;  %v682_v9 = vrot.slane %v677_v8, %v1049_v3 }
 0x105   :  { %v139_v15 = vadd.f32 %v138_v14, %v76_v7  ;;  %v142_v18 = vmax.f32 %v135_v11, 0.0 }
 0x106   :  { %v143_v17 = vmax.f32 %v137_v13, 0.0 }
 0x107   :  { %v144_v19 = vmax.f32 %v139_v15, 0.0 }
 0x108   :  { %v145_v20 = vpack.c.bf16 %v143_v17, %v141_v16 }
 0x109   :  { %v146_v21 = vpack.c.bf16 %v144_v19, %v142_v18  ;;  %v700_v19 = vand.u32 127, %v69_v1 }
 0x10b   :  { %383 = vmatprep.mubr.bf16.mxu1 %v146_v21  ;;  %v703_v21 = vsub.s32 %v700_v19, %v1046_v2 }
 0x10c   :  { %384 = vmatmul.mubr.bf16.vlgmr.msra.gmra.mrb[0].mxu1 %v145_v20  ;;  %v705_v20 = vadd.s32 4294967288, %v700_v19 }
 0x10e   :  { %v708_v3 = vsub.s32 %v705_v20, %v1046_v2 }
 0x1df   :  { %v385_v29 = vpop.f32.mrb[0].mxu1 }
 0x1e0   :  { %v386_v30 = vadd.f32 %v385_v29, %v184_v27  ;;  %v387_v31 = vpop.f32.mrb[1].mxu1 }
 0x1e1   :  { %v388_v32 = vadd.f32 %v387_v31, %v188_v28  ;;  %v389_v33 = vpop.f32.mrb[2].mxu1 }
 0x1e2   :  { %v390_v34 = vadd.f32 %v389_v33, %v184_v27  ;;  %v391_v35 = vpop.f32.mrb[3].mxu1  ;;  %v394_v37 = vmax.f32 %v386_v30, 0.0 }
 0x1e3   :  { %v392_v36 = vadd.f32 %v391_v35, %v188_v28  ;;  %v395_v39 = vmax.f32 %v388_v32, 0.0 }
 0x1e4   :  { %v396_v38 = vmax.f32 %v390_v34, 0.0 }
 0x1e5   :  { %v397_v40 = vmax.f32 %v392_v36, 0.0 }
 0x1e6   :  { %v398_v41 = vpack.c.bf16 %v396_v38, %v394_v37 }
 0x1e7   :  { %v399_v42 = vpack.c.bf16 %v397_v40, %v395_v39 }
 0x1e9   :  { %636 = vmatprep.mubr.bf16.mxu0 %v399_v42 }
 0x1ea   :  { %637 = vmatmul.mubr.bf16.vlgmr.msra.gmra.mrb[4].mxu0 %v398_v41 }
 0x2bd   :  { %v638_v48 = vpop.f32.mrb[4].mxu0 }
 0x2be   :  { %v639_v49 = vadd.f32 %v638_v48, %v437_v45  ;;  %v640_v50 = vpop.f32.mrb[5].mxu0 }
 0x2bf   :  { %v641_v52 = vadd.f32 %v640_v50, %v441_v46  ;;  %v642_v53 = vpop.f32.mrb[6].mxu0 }
 0x2c0   :  { %v647_v55 = vmax.f32 %v639_v49, 0.0  ;;  %v643_v56 = vadd.f32 %v642_v53, %v437_v45  ;;  %v644_v57 = vpop.f32.mrb[7].mxu0 }
 0x2c1   :  { %v648_v58 = vmax.f32 %v641_v52, 0.0  ;;  %v645_v59 = vadd.f32 %v644_v57, %v441_v46 }
 0x2c2   :  { %v649_v60 = vmax.f32 %v643_v56, 0.0  ;;  %v663_v61 = vmul.f32 %v656_v51, %v647_v55 }
 0x2c3   :  { %v650_v62 = vmax.f32 %v645_v59, 0.0  ;;  %v664_v63 = vmul.f32 %v660_v54, %v648_v58 }
 0x2c4   :  { %v665_v0 = vmul.f32 %v656_v51, %v649_v60 }
 0x2c5   :  { %v666_v4 = vmul.f32 %v660_v54, %v650_v62  ;;  %v667_v6 = vadd.f32 %v664_v63, %v663_v61 }
 0x2c7   :  { %668 = vadd.xlane.f32.xlu0 %v667_v6  ;;  %v670_v7 = vadd.f32 %v666_v4, %v665_v0 }
 0x2cb   :  { %671 = vadd.xlane.f32.xlu0 %v670_v7 }
 0x354   :  { %v669_v10 = vpop.xlane.xlu0 %668 }
 0x355   :  { %v683_v5 = vadd.f32 %v682_v9, %v669_v10 }
 0x357   :  { %v789_v11 = vmul.f32 -1.442695, %v683_v5 }
 0x358   :  { %v672_v12 = vpop.xlane.xlu0 %671 }
 0x359   :  { %898 = vpow2.f32 %v789_v11  ;;  %v684_v13 = vadd.f32 %v682_v9, %v672_v12 }
 0x35b   :  { %v790_v14 = vmul.f32 -1.442695, %v684_v13 }
 0x35d   :  { %900 = vpow2.f32 %v790_v14 }
 0x363   :  { %v899_v15 = vpop.eup %898 }
 0x364   :  { %v691_v16 = vadd.f32 1.0, %v899_v15 }
 0x366   :  { %902 = vrcp.f32 %v691_v16 }
 0x367   :  { %v901_v17 = vpop.eup %900 }
 0x368   :  { %v692_v18 = vadd.f32 1.0, %v901_v17 }
 0x36a   :  { %904 = vrcp.f32 %v692_v18 }
 0x370   :  { %v903_v22 = vpop.eup %902 }
 0x371   :  { %v704_v24 = vrot.slane %v903_v22, %v703_v21 }
 0x374   :  { %v905_v23 = vpop.eup %904 }
 0x375   :  { %v709_v25 = vrot.slane %v905_v23, %v708_v3 }
 0x377   :  { %v711_v26 = vsel %vm710_vm1, %v709_v25, %v704_v24 }
 0x378   :  { %714 = vst.msk [vmem:[%s1084_s9] sm:$0x1] %vm713_vm2, %v711_v26 }
 0x379   :  { %719 = vsyncpa [#allocation4], 1 }
 0x37a   :  { %720 = vsyncpa [#allocation6], 1 }

</bundles_post_ra>
